<compile_context>
chip_gen: v6e
topology: v6e:2x2x1
jax: 0.10.0
libtpu: 0.0.40
codegen_flags: <defaults>
</compile_context>

<pallas_src>
import jax
import jax.numpy as jnp
from jax.experimental import pallas as pl
from jax.experimental.pallas import tpu as pltpu


LN_EPS = 1e-5  # nn.LayerNorm default


def _round_up(x, m):
    return ((x + m - 1) // m) * m


def _vmem_budget_bytes():
    """Generation-aware budgets: v5e/v6e have 128 MiB VMEM, v7x has 64 MiB."""
    try:
        cap = int(pltpu.get_tpu_info().vmem_capacity_bytes)
    except Exception:
        cap = 64 * 1024 * 1024  # conservative (v7x-sized) fallback
    budget = cap // 2                                        # our tile budget
    limit = max(32 << 20, min((cap * 3) // 4, 100 << 20))    # Mosaic scoped VMEM limit
    return budget, limit


def _make_kernel(num_net, out_dim, use_prop, mxu_dtype):
    inv_n = 1.0 / float(out_dim)

    def kernel(*refs):
        if use_prop:
            x_ref, w_ref, aff_ref, prop_ref, o_ref = refs
        else:
            x_ref, w_ref, aff_ref, o_ref = refs

        # Streams unrolled (num_net is small & static); weights stay VMEM-resident.
        for i in range(num_net):
            xi = x_ref[i]                      # (TB, in_dim)
            wi = w_ref[i]                      # (in_dim, out_dim)
            if mxu_dtype is not None:
                xi = xi.astype(mxu_dtype)      # in-VMEM cast, no extra HBM traffic
                wi = wi.astype(mxu_dtype)
            y = jnp.dot(xi, wi, preferred_element_type=jnp.float32)

            aff = aff_ref[i].astype(jnp.float32)   # rows: bias, gamma, beta
            y = y + aff[0:1, :]

            # Single-pass LayerNorm statistics (f32).
            s1 = jnp.sum(y, axis=-1, keepdims=True)
            s2 = jnp.sum(y * y, axis=-1, keepdims=True)
            mean = s1 * inv_n
            var = s2 * inv_n - mean * mean
            y = (y - mean) * jax.lax.rsqrt(var + LN_EPS)
            y = y * aff[1:2, :] + aff[2:3, :]

            # Static, 128-aligned column slice of the concatenated output block.
            o_ref[:, i * out_dim:(i + 1) * out_dim] = (
                jnp.maximum(y, 0.0).astype(o_ref.dtype))

        if use_prop:
            # Fused concat: prop lands directly in its column block.
            o_ref[:, num_net * out_dim:] = prop_ref[...].astype(o_ref.dtype)

    return kernel


def _pick_batch_tile(B, in_dim, out_dim, width, prop_dim, num_net,
                     x_itemsize, w_itemsize, budget, sublane):
    """Largest sublane-multiple batch tile whose buffers fit the VMEM budget."""
    # Weights + affine are resident (charged double-buffered to be safe).
    fixed = 2 * num_net * (in_dim * out_dim + 3 * out_dim) * w_itemsize

    def need(tb):
        io_rows = (num_net * in_dim + width + prop_dim) * x_itemsize  # x + out + prop
        f32_tmp = 4 * out_dim * 4                                     # in-kernel f32 temps
        return fixed + 2 * tb * io_rows + tb * f32_tmp

    tb = min(_round_up(B, sublane), 2048)
    while tb > sublane and need(tb) > budget:
        tb = _round_up(tb // 2, sublane)
    if need(tb) > budget:
        return None  # even the minimum tile doesn't fit -> caller falls back
    return tb


def _xla_forward(x, prop, w, affine, use_prop):
    """Fallback for non-lane-aligned out_dim or oversized weights: let XLA fuse."""
    y = jnp.einsum("nbi,nio->nbo", x.astype(jnp.float32), w.astype(jnp.float32))
    y = y + affine[:, 0:1, :]
    mean = jnp.mean(y, axis=-1, keepdims=True)
    c = y - mean
    var = jnp.mean(c * c, axis=-1, keepdims=True)
    y = c * jax.lax.rsqrt(var + LN_EPS)
    y = y * affine[:, 1:2, :] + affine[:, 2:3, :]
    y = jnp.maximum(y, 0.0).astype(x.dtype)
    n, B, o = y.shape
    out = jnp.transpose(y, (1, 0, 2)).reshape(B, n * o)
    if use_prop:
        out = jnp.concatenate([out, prop], axis=1)
    return out


def linear_compress_forward(view_feats, prop, params, use_prop, *,
                            batch_tile=None, mxu_dtype=None):
    """view_feats: pre-stacked (num_net, B, in_dim) array (preferred) or a list of
    (B, in_dim) arrays.  prop: (B, prop_dim) or None.
    mxu_dtype: e.g. jnp.bfloat16 to feed the MXU in bf16 (f32 accumulation)."""
    w = params["w"]            # (num_net, in_dim, out_dim)   (already W^T)
    affine = params["affine"]  # (num_net, 3, out_dim)        rows: bias, gamma, beta
    num_net, in_dim, out_dim = w.shape

    if isinstance(view_feats, (list, tuple)):
        x = jnp.stack(view_feats, axis=0)   # convenience path: costs one HBM copy
    else:
        x = view_feats
    assert x.shape[0] == num_net and x.shape[2] == in_dim
    B = x.shape[1]

    if use_prop:
        assert prop is not None
        prop_dim = int(prop.shape[1])
    else:
        prop_dim = 0
    width = num_net * out_dim + prop_dim

    if out_dim % 128 != 0:
        # Sub-lane-width features: MXU / stores would be mostly masked -> use XLA.
        return _xla_forward(x, prop, w, affine, use_prop)

    budget, vmem_limit = _vmem_budget_bytes()
    sublane = 16 if (x.dtype == jnp.bfloat16 or mxu_dtype == jnp.bfloat16) else 8
    TB = batch_tile if batch_tile is not None else _pick_batch_tile(
        B, in_dim, out_dim, width, prop_dim, num_net,
        jnp.dtype(x.dtype).itemsize, jnp.dtype(w.dtype).itemsize, budget, sublane)
    if TB is None:
        # TODO(synk): add a K (in_dim) grid axis + f32 accumulator for weights that
        # do not fit VMEM; fall back to the XLA path for now.
        return _xla_forward(x, prop, w, affine, use_prop)

    nb = pl.cdiv(B, TB)

    in_specs = [
        pl.BlockSpec((num_net, TB, in_dim), lambda b: (0, b, 0)),        # x batch tile
        pl.BlockSpec((num_net, in_dim, out_dim), lambda b: (0, 0, 0)),   # weights (resident)
        pl.BlockSpec((num_net, 3, out_dim), lambda b: (0, 0, 0)),        # bias/gamma/beta
    ]
    args = [x, w, affine]
    if use_prop:
        in_specs.append(pl.BlockSpec((TB, prop_dim), lambda b: (b, 0)))  # prop batch tile
        args.append(prop)

    return pl.pallas_call(
        _make_kernel(num_net, out_dim, use_prop, mxu_dtype),
        out_shape=jax.ShapeDtypeStruct((B, width), x.dtype),
        grid=(nb,),
        in_specs=in_specs,
        # Full concatenated width per batch tile -> lane-dense, single HBM writeback.
        out_specs=pl.BlockSpec((TB, width), lambda b: (b, 0)),
        compiler_params=pltpu.CompilerParams(
            dimension_semantics=("parallel",),
            vmem_limit_bytes=vmem_limit,
        ),
    )(*args)


def init_params(key, in_dim, out_dim, num_net):
    kw, kb = jax.random.split(key)
    # nn.Linear weight is (out_dim, in_dim); store transposed for x @ W^T.
    w = jax.random.normal(kw, (num_net, in_dim, out_dim), jnp.float32) * 0.1
    b = jax.random.normal(kb, (num_net, 1, out_dim), jnp.float32) * 0.1
    # nn.LayerNorm default init: weight=1, bias=0
    gamma = jnp.ones((num_net, 1, out_dim), jnp.float32)
    beta = jnp.zeros((num_net, 1, out_dim), jnp.float32)
    affine = jnp.concatenate([b, gamma, beta], axis=1)   # (num_net, 3, out_dim)
    return {"w": w, "affine": affine}


def reference_forward(view_feats_stacked, prop, params, use_prop):
    w, affine = params["w"], params["affine"]
    num_net = w.shape[0]
    outs = []
    for i in range(num_net):
        y = view_feats_stacked[i] @ w[i] + affine[i, 0:1, :]
        mean = jnp.mean(y, axis=-1, keepdims=True)
        var = jnp.mean((y - mean) ** 2, axis=-1, keepdims=True)
        y = (y - mean) / jnp.sqrt(var + LN_EPS)
        y = y * affine[i, 1:2, :] + affine[i, 2:3, :]
        outs.append(jnp.maximum(y, 0.0))
    if use_prop:
        outs.append(prop)
    return jnp.concatenate(outs, axis=1)


if __name__ == "__main__":
    # Small but lane-aligned shapes so the Pallas path is exercised.
    B, in_dim, out_dim, num_net, prop_dim = 16, 64, 128, 3, 8
    use_prop = True

    key = jax.random.PRNGKey(0)
    kp, kx, kprop = jax.random.split(key, 3)
    params = init_params(kp, in_dim, out_dim, num_net)

    # Views kept pre-stacked (avoids an extra HBM copy before the kernel).
    x = jax.random.normal(kx, (num_net, B, in_dim), jnp.float32)
    prop = jax.random.normal(kprop, (B, prop_dim), jnp.float32)

    # Default (f32 MXU feed) path: must match the f32 reference tightly.
    out = jax.block_until_ready(linear_compress_forward(x, prop, params, use_prop))
    ref = reference_forward(x, prop, params, use_prop)
    assert out.shape == (B, out_dim * num_net + prop_dim), out.shape
    assert jnp.allclose(out, ref, atol=1e-4, rtol=1e-4), "mismatch vs reference (f32)"

    # bf16-fed MXU variant (halves MXU-input width, f32 accumulation): loose check.
    out_bf16 = jax.block_until_ready(
        linear_compress_forward(x, prop, params, use_prop, mxu_dtype=jnp.bfloat16))
    assert out_bf16.shape == out.shape
    assert bool(jnp.all(jnp.isfinite(out_bf16)))
    assert float(jnp.max(jnp.abs(out_bf16 - ref))) < 0.1, "mismatch vs reference (bf16 feed)"

    print("KERNEL_OK")
</pallas_src>

<mosaic_0001>
module attributes {stable_mosaic.version = 11 : i64} {
  func.func @kernel(%arg0: i32, %arg1: memref<3x16x64xf32, #tpu.memory_space<vmem>>, %arg2: memref<3x64x128xf32, #tpu.memory_space<vmem>>, %arg3: memref<3x3x128xf32, #tpu.memory_space<vmem>>, %arg4: memref<16x8xf32, #tpu.memory_space<vmem>>, %arg5: memref<16x392xf32, #tpu.memory_space<vmem>>) attributes {dimension_semantics = [#tpu.dimension_semantics<parallel>], iteration_bounds = array<i64: 1>, scalar_prefetch = 0 : i64, scratch_operands = 0 : i64, tpu.core_type = #tpu.core_type<tc>, window_params = [{transform_indices = @transform_0, window_bounds = array<i64: 3, 16, 64>}, {pipeline_mode = #tpu.pipeline_mode<synchronous>, transform_indices = @transform_1, window_bounds = array<i64: 3, 64, 128>}, {pipeline_mode = #tpu.pipeline_mode<synchronous>, transform_indices = @transform_2, window_bounds = array<i64: 3, 3, 128>}, {transform_indices = @transform_3, window_bounds = array<i64: 16, 8>}, {transform_indices = @transform_4, window_bounds = array<i64: 16, 392>}]} {
    %c0 = arith.constant 0 : index
    %c0_0 = arith.constant 0 : index
    %c0_1 = arith.constant 0 : index
    %0 = vector.load %arg1[%c0, %c0_0, %c0_1] : memref<3x16x64xf32, #tpu.memory_space<vmem>>, vector<1x16x64xf32>
    %1 = vector.shape_cast %0 : vector<1x16x64xf32> to vector<16x64xf32>
    %c0_2 = arith.constant 0 : index
    %c0_3 = arith.constant 0 : index
    %c0_4 = arith.constant 0 : index
    %2 = vector.load %arg2[%c0_2, %c0_3, %c0_4] : memref<3x64x128xf32, #tpu.memory_space<vmem>>, vector<1x64x128xf32>
    %3 = vector.shape_cast %2 : vector<1x64x128xf32> to vector<64x128xf32>
    %cst = arith.constant dense<0.000000e+00> : vector<16x128xf32>
    %4 = tpu.matmul %1, %3, %cst {dimension_numbers = #tpu.dot_dimension_numbers<[1], [0], [0], [1], [0, 0, 1, 1], [], []>} : vector<16x64xf32>, vector<64x128xf32>, vector<16x128xf32> -> vector<16x128xf32>
    %c0_5 = arith.constant 0 : index
    %c0_6 = arith.constant 0 : index
    %c0_7 = arith.constant 0 : index
    %5 = vector.load %arg3[%c0_5, %c0_6, %c0_7] : memref<3x3x128xf32, #tpu.memory_space<vmem>>, vector<1x3x128xf32>
    %6 = vector.shape_cast %5 : vector<1x3x128xf32> to vector<3x128xf32>
    %7 = vector.extract_strided_slice %6 {offsets = [0, 0], sizes = [1, 128], strides = [1, 1]} : vector<3x128xf32> to vector<1x128xf32>
    %8 = vector.broadcast %7 : vector<1x128xf32> to vector<16x128xf32>
    %9 = arith.addf %4, %8 : vector<16x128xf32>
    %cst_8 = arith.constant dense<0.000000e+00> : vector<16xf32>
    %10 = vector.multi_reduction <add>, %9, %cst_8 [1] : vector<16x128xf32> to vector<16xf32>
    %11 = vector.shape_cast %10 : vector<16xf32> to vector<16x1xf32>
    %12 = arith.mulf %9, %9 : vector<16x128xf32>
    %cst_9 = arith.constant dense<0.000000e+00> : vector<16xf32>
    %13 = vector.multi_reduction <add>, %12, %cst_9 [1] : vector<16x128xf32> to vector<16xf32>
    %14 = vector.shape_cast %13 : vector<16xf32> to vector<16x1xf32>
    %cst_10 = arith.constant 7.812500e-03 : f32
    %15 = vector.broadcast %cst_10 : f32 to vector<16x1xf32>
    %16 = arith.mulf %11, %15 : vector<16x1xf32>
    %cst_11 = arith.constant 7.812500e-03 : f32
    %17 = vector.broadcast %cst_11 : f32 to vector<16x1xf32>
    %18 = arith.mulf %14, %17 : vector<16x1xf32>
    %19 = arith.mulf %16, %16 : vector<16x1xf32>
    %20 = arith.subf %18, %19 : vector<16x1xf32>
    %21 = vector.broadcast %16 : vector<16x1xf32> to vector<16x128xf32>
    %22 = arith.subf %9, %21 : vector<16x128xf32>
    %cst_12 = arith.constant 9.99999974E-6 : f32
    %23 = vector.broadcast %cst_12 : f32 to vector<16x1xf32>
    %24 = arith.addf %20, %23 : vector<16x1xf32>
    %25 = math.rsqrt %24 : vector<16x1xf32>
    %26 = vector.broadcast %25 : vector<16x1xf32> to vector<16x128xf32>
    %27 = arith.mulf %22, %26 : vector<16x128xf32>
    %28 = vector.extract_strided_slice %6 {offsets = [1, 0], sizes = [1, 128], strides = [1, 1]} : vector<3x128xf32> to vector<1x128xf32>
    %29 = vector.broadcast %28 : vector<1x128xf32> to vector<16x128xf32>
    %30 = arith.mulf %27, %29 : vector<16x128xf32>
    %31 = vector.extract_strided_slice %6 {offsets = [2, 0], sizes = [1, 128], strides = [1, 1]} : vector<3x128xf32> to vector<1x128xf32>
    %32 = vector.broadcast %31 : vector<1x128xf32> to vector<16x128xf32>
    %33 = arith.addf %30, %32 : vector<16x128xf32>
    %cst_13 = arith.constant 0.000000e+00 : f32
    %34 = vector.broadcast %cst_13 : f32 to vector<16x128xf32>
    %35 = arith.maximumf %33, %34 : vector<16x128xf32>
    %c0_14 = arith.constant 0 : index
    %c0_15 = arith.constant 0 : index
    %36 = vector.load %arg5[%c0_14, %c0_15] : memref<16x392xf32, #tpu.memory_space<vmem>>, vector<16x128xf32>
    tpu.vector_store %arg5[%c0_14, %c0_15], %35 {strides = array<i32>} : memref<16x392xf32, #tpu.memory_space<vmem>>, vector<16x128xf32>,
    %c1 = arith.constant 1 : index
    %c0_16 = arith.constant 0 : index
    %c0_17 = arith.constant 0 : index
    %37 = vector.load %arg1[%c1, %c0_16, %c0_17] : memref<3x16x64xf32, #tpu.memory_space<vmem>>, vector<1x16x64xf32>
    %38 = vector.shape_cast %37 : vector<1x16x64xf32> to vector<16x64xf32>
    %c1_18 = arith.constant 1 : index
    %c0_19 = arith.constant 0 : index
    %c0_20 = arith.constant 0 : index
    %39 = vector.load %arg2[%c1_18, %c0_19, %c0_20] : memref<3x64x128xf32, #tpu.memory_space<vmem>>, vector<1x64x128xf32>
    %40 = vector.shape_cast %39 : vector<1x64x128xf32> to vector<64x128xf32>
    %cst_21 = arith.constant dense<0.000000e+00> : vector<16x128xf32>
    %41 = tpu.matmul %38, %40, %cst_21 {dimension_numbers = #tpu.dot_dimension_numbers<[1], [0], [0], [1], [0, 0, 1, 1], [], []>} : vector<16x64xf32>, vector<64x128xf32>, vector<16x128xf32> -> vector<16x128xf32>
    %c1_22 = arith.constant 1 : index
    %c0_23 = arith.constant 0 : index
    %c0_24 = arith.constant 0 : index
    %42 = vector.load %arg3[%c1_22, %c0_23, %c0_24] : memref<3x3x128xf32, #tpu.memory_space<vmem>>, vector<1x3x128xf32>
    %43 = vector.shape_cast %42 : vector<1x3x128xf32> to vector<3x128xf32>
    %44 = vector.extract_strided_slice %43 {offsets = [0, 0], sizes = [1, 128], strides = [1, 1]} : vector<3x128xf32> to vector<1x128xf32>
    %45 = vector.broadcast %44 : vector<1x128xf32> to vector<16x128xf32>
    %46 = arith.addf %41, %45 : vector<16x128xf32>
    %cst_25 = arith.constant dense<0.000000e+00> : vector<16xf32>
    %47 = vector.multi_reduction <add>, %46, %cst_25 [1] : vector<16x128xf32> to vector<16xf32>
    %48 = vector.shape_cast %47 : vector<16xf32> to vector<16x1xf32>
    %49 = arith.mulf %46, %46 : vector<16x128xf32>
    %cst_26 = arith.constant dense<0.000000e+00> : vector<16xf32>
    %50 = vector.multi_reduction <add>, %49, %cst_26 [1] : vector<16x128xf32> to vector<16xf32>
    %51 = vector.shape_cast %50 : vector<16xf32> to vector<16x1xf32>
    %cst_27 = arith.constant 7.812500e-03 : f32
    %52 = vector.broadcast %cst_27 : f32 to vector<16x1xf32>
    %53 = arith.mulf %48, %52 : vector<16x1xf32>
    %cst_28 = arith.constant 7.812500e-03 : f32
    %54 = vector.broadcast %cst_28 : f32 to vector<16x1xf32>
    %55 = arith.mulf %51, %54 : vector<16x1xf32>
    %56 = arith.mulf %53, %53 : vector<16x1xf32>
    %57 = arith.subf %55, %56 : vector<16x1xf32>
    %58 = vector.broadcast %53 : vector<16x1xf32> to vector<16x128xf32>
    %59 = arith.subf %46, %58 : vector<16x128xf32>
    %cst_29 = arith.constant 9.99999974E-6 : f32
    %60 = vector.broadcast %cst_29 : f32 to vector<16x1xf32>
    %61 = arith.addf %57, %60 : vector<16x1xf32>
    %62 = math.rsqrt %61 : vector<16x1xf32>
    %63 = vector.broadcast %62 : vector<16x1xf32> to vector<16x128xf32>
    %64 = arith.mulf %59, %63 : vector<16x128xf32>
    %65 = vector.extract_strided_slice %43 {offsets = [1, 0], sizes = [1, 128], strides = [1, 1]} : vector<3x128xf32> to vector<1x128xf32>
    %66 = vector.broadcast %65 : vector<1x128xf32> to vector<16x128xf32>
    %67 = arith.mulf %64, %66 : vector<16x128xf32>
    %68 = vector.extract_strided_slice %43 {offsets = [2, 0], sizes = [1, 128], strides = [1, 1]} : vector<3x128xf32> to vector<1x128xf32>
    %69 = vector.broadcast %68 : vector<1x128xf32> to vector<16x128xf32>
    %70 = arith.addf %67, %69 : vector<16x128xf32>
    %cst_30 = arith.constant 0.000000e+00 : f32
    %71 = vector.broadcast %cst_30 : f32 to vector<16x128xf32>
    %72 = arith.maximumf %70, %71 : vector<16x128xf32>
    %c0_31 = arith.constant 0 : index
    %c128 = arith.constant 128 : index
    %73 = vector.load %arg5[%c0_31, %c128] : memref<16x392xf32, #tpu.memory_space<vmem>>, vector<16x128xf32>
    tpu.vector_store %arg5[%c0_31, %c128], %72 {strides = array<i32>} : memref<16x392xf32, #tpu.memory_space<vmem>>, vector<16x128xf32>,
    %c2 = arith.constant 2 : index
    %c0_32 = arith.constant 0 : index
    %c0_33 = arith.constant 0 : index
    %74 = vector.load %arg1[%c2, %c0_32, %c0_33] : memref<3x16x64xf32, #tpu.memory_space<vmem>>, vector<1x16x64xf32>
    %75 = vector.shape_cast %74 : vector<1x16x64xf32> to vector<16x64xf32>
    %c2_34 = arith.constant 2 : index
    %c0_35 = arith.constant 0 : index
    %c0_36 = arith.constant 0 : index
    %76 = vector.load %arg2[%c2_34, %c0_35, %c0_36] : memref<3x64x128xf32, #tpu.memory_space<vmem>>, vector<1x64x128xf32>
    %77 = vector.shape_cast %76 : vector<1x64x128xf32> to vector<64x128xf32>
    %cst_37 = arith.constant dense<0.000000e+00> : vector<16x128xf32>
    %78 = tpu.matmul %75, %77, %cst_37 {dimension_numbers = #tpu.dot_dimension_numbers<[1], [0], [0], [1], [0, 0, 1, 1], [], []>} : vector<16x64xf32>, vector<64x128xf32>, vector<16x128xf32> -> vector<16x128xf32>
    %c2_38 = arith.constant 2 : index
    %c0_39 = arith.constant 0 : index
    %c0_40 = arith.constant 0 : index
    %79 = vector.load %arg3[%c2_38, %c0_39, %c0_40] : memref<3x3x128xf32, #tpu.memory_space<vmem>>, vector<1x3x128xf32>
    %80 = vector.shape_cast %79 : vector<1x3x128xf32> to vector<3x128xf32>
    %81 = vector.extract_strided_slice %80 {offsets = [0, 0], sizes = [1, 128], strides = [1, 1]} : vector<3x128xf32> to vector<1x128xf32>
    %82 = vector.broadcast %81 : vector<1x128xf32> to vector<16x128xf32>
    %83 = arith.addf %78, %82 : vector<16x128xf32>
    %cst_41 = arith.constant dense<0.000000e+00> : vector<16xf32>
    %84 = vector.multi_reduction <add>, %83, %cst_41 [1] : vector<16x128xf32> to vector<16xf32>
    %85 = vector.shape_cast %84 : vector<16xf32> to vector<16x1xf32>
    %86 = arith.mulf %83, %83 : vector<16x128xf32>
    %cst_42 = arith.constant dense<0.000000e+00> : vector<16xf32>
    %87 = vector.multi_reduction <add>, %86, %cst_42 [1] : vector<16x128xf32> to vector<16xf32>
    %88 = vector.shape_cast %87 : vector<16xf32> to vector<16x1xf32>
    %cst_43 = arith.constant 7.812500e-03 : f32
    %89 = vector.broadcast %cst_43 : f32 to vector<16x1xf32>
    %90 = arith.mulf %85, %89 : vector<16x1xf32>
    %cst_44 = arith.constant 7.812500e-03 : f32
    %91 = vector.broadcast %cst_44 : f32 to vector<16x1xf32>
    %92 = arith.mulf %88, %91 : vector<16x1xf32>
    %93 = arith.mulf %90, %90 : vector<16x1xf32>
    %94 = arith.subf %92, %93 : vector<16x1xf32>
    %95 = vector.broadcast %90 : vector<16x1xf32> to vector<16x128xf32>
    %96 = arith.subf %83, %95 : vector<16x128xf32>
    %cst_45 = arith.constant 9.99999974E-6 : f32
    %97 = vector.broadcast %cst_45 : f32 to vector<16x1xf32>
    %98 = arith.addf %94, %97 : vector<16x1xf32>
    %99 = math.rsqrt %98 : vector<16x1xf32>
    %100 = vector.broadcast %99 : vector<16x1xf32> to vector<16x128xf32>
    %101 = arith.mulf %96, %100 : vector<16x128xf32>
    %102 = vector.extract_strided_slice %80 {offsets = [1, 0], sizes = [1, 128], strides = [1, 1]} : vector<3x128xf32> to vector<1x128xf32>
    %103 = vector.broadcast %102 : vector<1x128xf32> to vector<16x128xf32>
    %104 = arith.mulf %101, %103 : vector<16x128xf32>
    %105 = vector.extract_strided_slice %80 {offsets = [2, 0], sizes = [1, 128], strides = [1, 1]} : vector<3x128xf32> to vector<1x128xf32>
    %106 = vector.broadcast %105 : vector<1x128xf32> to vector<16x128xf32>
    %107 = arith.addf %104, %106 : vector<16x128xf32>
    %cst_46 = arith.constant 0.000000e+00 : f32
    %108 = vector.broadcast %cst_46 : f32 to vector<16x128xf32>
    %109 = arith.maximumf %107, %108 : vector<16x128xf32>
    %c0_47 = arith.constant 0 : index
    %c256 = arith.constant 256 : index
    %110 = vector.load %arg5[%c0_47, %c256] : memref<16x392xf32, #tpu.memory_space<vmem>>, vector<16x128xf32>
    tpu.vector_store %arg5[%c0_47, %c256], %109 {strides = array<i32>} : memref<16x392xf32, #tpu.memory_space<vmem>>, vector<16x128xf32>,
    %c0_48 = arith.constant 0 : index
    %c0_49 = arith.constant 0 : index
    %111 = vector.load %arg4[%c0_48, %c0_49] : memref<16x8xf32, #tpu.memory_space<vmem>>, vector<16x8xf32>
    %c0_50 = arith.constant 0 : index
    %c384 = arith.constant 384 : index
    %112 = vector.load %arg5[%c0_50, %c384] : memref<16x392xf32, #tpu.memory_space<vmem>>, vector<16x8xf32>
    tpu.vector_store %arg5[%c0_50, %c384], %111 {strides = array<i32>} : memref<16x392xf32, #tpu.memory_space<vmem>>, vector<16x8xf32>,
    return
  }
  func.func @transform_0(%arg0: i32) -> (i32, i32, i32) {
    %c0_i32 = arith.constant 0 : i32
    %c0_i32_0 = arith.constant 0 : i32
    %c0_i32_1 = arith.constant 0 : i32
    return %c0_i32, %arg0, %c0_i32_0 : i32, i32, i32
  }
  func.func @transform_1(%arg0: i32) -> (i32, i32, i32) {
    %c0_i32 = arith.constant 0 : i32
    %c0_i32_0 = arith.constant 0 : i32
    %c0_i32_1 = arith.constant 0 : i32
    %c0_i32_2 = arith.constant 0 : i32
    return %c0_i32, %c0_i32_0, %c0_i32_1 : i32, i32, i32
  }
  func.func @transform_2(%arg0: i32) -> (i32, i32, i32) {
    %c0_i32 = arith.constant 0 : i32
    %c0_i32_0 = arith.constant 0 : i32
    %c0_i32_1 = arith.constant 0 : i32
    %c0_i32_2 = arith.constant 0 : i32
    return %c0_i32, %c0_i32_0, %c0_i32_1 : i32, i32, i32
  }
  func.func @transform_3(%arg0: i32) -> (i32, i32) {
    %c0_i32 = arith.constant 0 : i32
    %c0_i32_0 = arith.constant 0 : i32
    return %arg0, %c0_i32 : i32, i32
  }
  func.func @transform_4(%arg0: i32) -> (i32, i32) {
    %c0_i32 = arith.constant 0 : i32
    %c0_i32_0 = arith.constant 0 : i32
    return %arg0, %c0_i32 : i32, i32
  }
}

</mosaic_0001>

<bundles_post_ra>
// kernel: tpu_custom_call.1
= control target key start
LH: loop header
LB: loop body
LE: loop exit
PB: predicated region body
PF: predicated region fallthrough
CT: control target
= control target key end

     0   :  { %9 = vsyncpa [#allocation3], 0  ;;  %s793_s0 = inlined_call_operand.hbm [shape: f32[3,16,64], index: 0, kind: input, shape index: {}]   ;;  %s794_s1 = inlined_call_operand.hbm [shape: f32[3,64,128], index: 1, kind: input, shape index: {}]   ;;  %s795_s2 = inlined_call_operand.vmem [shape: f32[3,3,128], index: 2, kind: input, shape index: {}]   ;;  %s796_s3 = inlined_call_operand.vmem [shape: f32[16,8], index: 3, kind: input, shape index: {}]   ;;  %s797_s4 = inlined_call_operand.hbm [shape: f32[16,392], index: 4, kind: output, shape index: {}]  }
   0x1   :  { %10 = vsyncpa [#allocation6], 0 }
   0x2   :  { %11 = vsyncpa [#allocation4], 0  ;;  %s670_s15 = smov [#allocation2]  }
   0x3   :  { %s17_s16 = sshll.u32 %s670_s15, 4  ;;  %s18_s16 = int_to_ptr.vmem [resolvable:$true] %s17_s16 }
   0x4   :  { %s612_s17 = scalar_lea.vmem %s18_s16, 768  ;;  %p617_p1 = scmp.lt.s32.totalorder %s18_s16, %s18_s16 }
   0x5   :  { %p613_p0 = scmp.ne.s32.totalorder %s18_s16, %s612_s17  ;;  %p618_p2 = scmp.lt.s32.totalorder %s612_s17, %s612_s17 }
   0x7   :  { %p619_p3 = por %p618_p2, %p617_p1 }
   0x9   :  { %p620_p4 = pnand %p619_p3, %p613_p0 }
   0xb   :  { %623 = shalt.err (!%p620_p4)
}
   0xc   :  { %s671_s18 = smov 128   ;;  %s672_s19 = smov 8  }
   0xd   :  { %23 = dma.hbm_to_vmem [thread:$0]  %s793_s0, 768, %s18_s16, [#allocation3], %s671_s18, %s671_s18, %s672_s19  }
   0xe   :  { %s673_s22 = smov [#allocation5]  }
   0xf   :  { %s29_s23 = sshll.u32 %s673_s22, 4  ;;  %s30_s23 = int_to_ptr.vmem [resolvable:$true] %s29_s23 }
  0x10   :  { %s632_s24 = scalar_lea.vmem %s30_s23, 3072  ;;  %p637_p6 = scmp.lt.s32.totalorder %s30_s23, %s30_s23 }
  0x11   :  { %p633_p5 = scmp.ne.s32.totalorder %s30_s23, %s632_s24  ;;  %p638_p7 = scmp.lt.s32.totalorder %s632_s24, %s632_s24 }
  0x13   :  { %p639_p8 = por %p638_p7, %p637_p6 }
  0x15   :  { %p640_p9 = pnand %p639_p8, %p633_p5 }
  0x17   :  { %643 = shalt.err (!%p640_p9)
}
  0x18   :  { %35 = dma.hbm_to_vmem [thread:$0]  %s794_s1, 3072, %s30_s23, [#allocation6], %s671_s18, %s671_s18, %s672_s19  }
  0x19   :  { %664 = dma.done.wait [#allocation3], 768  }
  0x1a   :  { %665 = vsyncadd [#allocation3], 4294966528 }
  0x1b   :  { %666 = dma.done.wait [#allocation6], 3072  }
  0x1c   :  { %667 = vsyncadd [#allocation6], 4294964224  ;;  %v55_v0 = vld [vmem:[#allocation5 + $0x38] sm:$0xff]  ;;  %v54_v2 = vld [vmem:[#allocation5 + $0x30] sm:$0xff]  ;;  %vm61_vm0 = vcmask 523264   ;;  %v57_v30 = vlaneseq  ;;  %vm469_vm1 = vcmask 64512  }
  0x1d   :  { %v196_v1 = vld [vmem:[#allocation5 + $0x78] sm:$0xff]  ;;  %528 = vmatprep.subr.mxu0 %v55_v0  ;;  %v195_v3 = vld [vmem:[#allocation5 + $0x70] sm:$0xff]  ;;  %v53_v4 = vld [vmem:[#allocation5 + $0x28] sm:$0xff] }
  0x1e   :  { %547 = vmatprep.subr.mxu1 %v196_v1  ;;  %529 = vmatpush3.msra.mxu0 %v55_v0  ;;  %v194_v5 = vld [vmem:[#allocation5 + $0x68] sm:$0xff]  ;;  %v52_v6 = vld [vmem:[#allocation5 + $0x20] sm:$0xff]  ;;  %v51_v8 = vld [vmem:[#allocation5 + $0x18] sm:$0xff]  ;;  %v714_v31 = vshrl.u32 %v57_v30, 7 }
  0x1f   :  { %548 = vmatpush3.msra.mxu1 %v196_v1  ;;  %530 = vmatprep.subr.mxu0 %v54_v2  ;;  %v193_v7 = vld [vmem:[#allocation5 + $0x60] sm:$0xff]  ;;  %v192_v9 = vld [vmem:[#allocation5 + $0x58] sm:$0xff]  ;;  %v50_v10 = vld [vmem:[#allocation5 + $0x10] sm:$0xff] }
  0x20   :  { %549 = vmatprep.subr.mxu1 %v195_v3  ;;  %531 = vmatpush3.msra.mxu0 %v54_v2  ;;  %v191_v11 = vld [vmem:[#allocation5 + $0x50] sm:$0xff]  ;;  %v49_v12 = vld [vmem:[#allocation5 + $0x8] sm:$0xff]  ;;  %v48_v14 = vld [vmem:[#allocation5] sm:$0xff]  ;;  %v59_v32 = vsub.s32 0, %v714_v31  ;;  %v171_v30 = vsub.s32 1, %v714_v31 }
  0x21   :  { %550 = vmatpush3.msra.mxu1 %v195_v3  ;;  %532 = vmatprep.subr.mxu0 %v53_v4  ;;  %v190_v13 = vld [vmem:[#allocation5 + $0x48] sm:$0xff]  ;;  %v189_v15 = vld [vmem:[#allocation5 + $0x40] sm:$0xff]  ;;  %v46_v16 = vld [vmem:[#allocation2] sm:$0xff] }
  0x22   :  { %551 = vmatprep.subr.mxu1 %v194_v5  ;;  %533 = vmatpush3.msra.mxu0 %v53_v4  ;;  %v186_v17 = vld [vmem:[#allocation2 + $0x10] sm:$0xff]  ;;  %v47_v18 = vld [vmem:[#allocation2 + $0x8] sm:$0xff]  ;;  %v187_v19 = vld [vmem:[#allocation2 + $0x18] sm:$0xff] }
  0x23   :  { %552 = vmatpush3.msra.mxu1 %v194_v5  ;;  %534 = vmatprep.subr.mxu0 %v52_v6  ;;  %v337_v20 = vld [vmem:[#allocation5 + $0xb8] sm:$0xff]  ;;  %v327_v21 = vld [vmem:[#allocation2 + $0x20] sm:$0xff]  ;;  %v335_v23 = vld [vmem:[#allocation5 + $0xa8] sm:$0xff] }
  0x24   :  { %553 = vmatprep.subr.mxu1 %v193_v7  ;;  %535 = vmatpush3.msra.mxu0 %v52_v6  ;;  %v336_v22 = vld [vmem:[#allocation5 + $0xb0] sm:$0xff]  ;;  %v334_v24 = vld [vmem:[#allocation5 + $0xa0] sm:$0xff]  ;;  %v333_v25 = vld [vmem:[#allocation5 + $0x98] sm:$0xff] }
  0x25   :  { %554 = vmatpush3.msra.mxu1 %v193_v7  ;;  %536 = vmatprep.subr.mxu0 %v51_v8  ;;  %v332_v26 = vld [vmem:[#allocation5 + $0x90] sm:$0xff]  ;;  %v331_v27 = vld [vmem:[#allocation5 + $0x88] sm:$0xff]  ;;  %v330_v28 = vld [vmem:[#allocation5 + $0x80] sm:$0xff] }
  0x26   :  { %555 = vmatprep.subr.mxu1 %v192_v9  ;;  %537 = vmatpush3.msra.mxu0 %v51_v8  ;;  %v328_v29 = vld [vmem:[#allocation2 + $0x28] sm:$0xff]  ;;  %v720_v33 = vld [vmem:[%s795_s2] sm:$0x7]  ;;  %v725_v34 = vld [vmem:[%s795_s2 + $0x4] sm:$0x7] }
  0x27   :  { %556 = vmatpush3.msra.mxu1 %v192_v9  ;;  %538 = vmatprep.subr.mxu0 %v50_v10  ;;  %v60_v35 = vrot.slane %v720_v33, %v59_v32  ;;  %v202_v36 = vrot.slane %v725_v34, %v59_v32  ;;  %v748_v47 = vld [vmem:[%s795_s2 + $0x8] sm:$0x7]  ;;  %v467_v57 = vld [vmem:[%s796_s3] sm:$0xff] }
  0x28   :  { %557 = vmatprep.subr.mxu1 %v191_v11  ;;  %539 = vmatpush3.msra.mxu0 %v50_v10  ;;  %v343_v50 = vrot.slane %v748_v47, %v59_v32  ;;  %v468_v58 = vld [vmem:[%s796_s3 + $0x8] sm:$0xff]  ;;  %470 = vst.msk [vmem:[#allocation7 + $0x18] sm:$0xff] %vm469_vm1, %v467_v57  ;;  %v313_v57 = vrot.slane %v725_v34, %v171_v30  ;;  %s674_s3 = smov [#allocation7]  }
  0x29   :  { %558 = vmatpush3.msra.mxu1 %v191_v11  ;;  %540 = vmatprep.subr.mxu0 %v49_v12  ;;  %471 = vst.msk [vmem:[#allocation7 + $0x38] sm:$0xff] %vm469_vm1, %v468_v58  ;;  %s477_s8 = sshll.u32 %s674_s3, 4  ;;  %s478_s8 = int_to_ptr.vmem [resolvable:$true] %s477_s8 }
  0x2a   :  { %559 = vmatprep.subr.mxu1 %v190_v13  ;;  %541 = vmatpush3.msra.mxu0 %v49_v12  ;;  %s644_s9 = scalar_lea.vmem %s478_s8, 1024  ;;  %p649_p11 = scmp.lt.s32.totalorder %s478_s8, %s478_s8 }
  0x2b   :  { %560 = vmatpush3.msra.mxu1 %v190_v13  ;;  %542 = vmatprep.subr.mxu0 %v48_v14  ;;  %p645_p10 = scmp.ne.s32.totalorder %s478_s8, %s644_s9  ;;  %p650_p12 = scmp.lt.s32.totalorder %s644_s9, %s644_s9 }
  0x2c   :  { %561 = vmatprep.subr.mxu1 %v189_v15  ;;  %543 = vmatpush3.msra.mxu0 %v48_v14 }
  0x2d   :  { %544 = vmatprep.mubr.msk.f32.mxu0 %vm61_vm0, %v46_v16  ;;  %562 = vmatpush3.msra.mxu1 %v189_v15  ;;  %p651_p13 = por %p650_p12, %p649_p11 }
  0x2e   :  { %563 = vmatprep.mubr.msk.f32.mxu1 %vm61_vm0, %v186_v17  ;;  %545 = vmatmul.mubr.msk.f32.vlgmr.msra.gmra.mxu0 %vm61_vm0, %v47_v18 }
  0x2f   :  { %564 = vmatmul.mubr.msk.f32.vlgmr.msra.gmra.mxu1 %vm61_vm0, %v187_v19  ;;  %566 = vmatprep.subr.mxu0 %v337_v20  ;;  %p652_p0 = pnand %p651_p13, %p645_p10 }
  0x30   :  { %582 = vmatprep.mubr.msk.f32.mxu0 %vm61_vm0, %v327_v21  ;;  %567 = vmatpush3.msra.mxu0 %v337_v20 }
  0x31   :  { %568 = vmatprep.subr.mxu0 %v336_v22 }
  0x32   :  { %569 = vmatpush3.msra.mxu0 %v336_v22 }
  0x33   :  { %570 = vmatprep.subr.mxu0 %v335_v23 }
  0x34   :  { %571 = vmatpush3.msra.mxu0 %v335_v23 }
  0x35   :  { %572 = vmatprep.subr.mxu0 %v334_v24 }
  0x36   :  { %573 = vmatpush3.msra.mxu0 %v334_v24 }
  0x37   :  { %574 = vmatprep.subr.mxu0 %v333_v25 }
  0x38   :  { %575 = vmatpush3.msra.mxu0 %v333_v25 }
  0x39   :  { %576 = vmatprep.subr.mxu0 %v332_v26 }
  0x3a   :  { %577 = vmatpush3.msra.mxu0 %v332_v26 }
  0x3b   :  { %578 = vmatprep.subr.mxu0 %v331_v27 }
  0x3c   :  { %579 = vmatpush3.msra.mxu0 %v331_v27 }
  0x3d   :  { %580 = vmatprep.subr.mxu0 %v330_v28 }
  0x3e   :  { %581 = vmatpush3.msra.mxu0 %v330_v28 }
  0x3f   :  { %583 = vmatmul.mubr.msk.f32.vlgmr.msra.gmra.mxu0 %vm61_vm0, %v328_v29 }
  0xee   :  { %v546_v37 = vpop.f32.mrf.mxu0 }
  0xef   :  { %v565_v38 = vpop.f32.mrf.mxu1  ;;  %v729_v39 = vadd.f32 %v546_v37, %v60_v35 }
  0xf0   :  { %v731_v40 = vadd.f32 %v565_v38, %v202_v36  ;;  %v134_v41 = vpop.f32.mrf.mxu0  ;;  %v177_v38 = vsub.s32 2, %v714_v31 }
  0xf1   :  { %v275_v42 = vpop.f32.mrf.mxu1  ;;  %145 = vadd.xlane.f32.xlu0 %v729_v39  ;;  %v735_v43 = vadd.f32 %v134_v41, %v60_v35  ;;  %v148_v45 = vmul.f32 %v729_v39, %v729_v39 }
  0xf2   :  { %286 = vadd.xlane.f32.xlu1 %v731_v40  ;;  %v737_v44 = vadd.f32 %v275_v42, %v202_v36  ;;  %v289_v48 = vmul.f32 %v731_v40, %v731_v40 }
  0xf3   :  { %v147_v46 = vmul.f32 %v735_v43, %v735_v43 }
  0xf4   :  { %v288_v49 = vmul.f32 %v737_v44, %v737_v44 }
  0xf5   :  { %143 = vadd.xlane.f32.xlu0 %v735_v43 }
  0xf6   :  { %284 = vadd.xlane.f32.xlu1 %v737_v44 }
  0xf9   :  { %149 = vadd.xlane.f32.xlu0 %v147_v46 }
  0xfa   :  { %151 = vadd.xlane.f32.xlu1 %v148_v45  ;;  %v172_v45 = vrot.slane %v720_v33, %v171_v30 }
  0xfd   :  { %290 = vadd.xlane.f32.xlu0 %v288_v49 }
  0xfe   :  { %292 = vadd.xlane.f32.xlu1 %v289_v48 }
  0xff   :  { %v584_v51 = vpop.f32.mrf.mxu0 }
 0x100   :  { %v755_v52 = vadd.f32 %v584_v51, %v343_v50 }
 0x101   :  { %v416_v53 = vpop.f32.mrf.mxu0 }
 0x102   :  { %v757_v54 = vadd.f32 %v416_v53, %v343_v50  ;;  %427 = vadd.xlane.f32.xlu1 %v755_v52  ;;  %v430_v55 = vmul.f32 %v755_v52, %v755_v52  ;;  %v178_v53 = vrot.slane %v720_v33, %v177_v38 }
 0x104   :  { %425 = vadd.xlane.f32.xlu0 %v757_v54  ;;  %v429_v56 = vmul.f32 %v757_v54, %v757_v54 }
 0x106   :  { %433 = vadd.xlane.f32.xlu1 %v430_v55 }
 0x108   :  { %431 = vadd.xlane.f32.xlu0 %v429_v56 }
 0x17a   :  { %v146_v60 = vpop.xlane.xlu0 %145 }
 0x17b   :  { %v287_v59 = vpop.xlane.xlu1 %286  ;;  %v154_v63 = vmul.f32 0.0078125, %v146_v60 }
 0x17c   :  { %v295_v8 = vmul.f32 0.0078125, %v287_v59 }
 0x17d   :  { %v158_v4 = vmul.f32 %v154_v63, %v154_v63  ;;  %v162_v46 = vsub.f32 %v729_v39, %v154_v63 }
 0x17e   :  { %v144_v62 = vpop.xlane.xlu0 %143  ;;  %v299_v11 = vmul.f32 %v295_v8, %v295_v8  ;;  %v303_v31 = vsub.f32 %v731_v40, %v295_v8  ;;  %v454_v8 = vrot.slane %v748_v47, %v171_v30 }
 0x17f   :  { %v285_v61 = vpop.xlane.xlu1 %284  ;;  %v153_v0 = vmul.f32 0.0078125, %v144_v62 }
 0x180   :  { %v771_v1 = vmul.f32 0.0078125, %v285_v61 }
 0x181   :  { %v157_v5 = vmul.f32 %v153_v0, %v153_v0  ;;  %v161_v49 = vsub.f32 %v735_v43, %v153_v0  ;;  %v319_v43 = vrot.slane %v725_v34, %v177_v38  ;;  %v460_v34 = vrot.slane %v748_v47, %v177_v38 }
 0x182   :  { %v150_v3 = vpop.xlane.xlu0 %149  ;;  %v298_v12 = vmul.f32 %v771_v1, %v771_v1  ;;  %v302_v39 = vsub.f32 %v737_v44, %v771_v1 }
 0x183   :  { %v152_v2 = vpop.xlane.xlu1 %151  ;;  %v155_v7 = vmul.f32 0.0078125, %v150_v3 }
 0x184   :  { %v156_v6 = vmul.f32 0.0078125, %v152_v2 }
 0x185   :  { %v159_v10 = vsub.f32 %v155_v7, %v157_v5 }
 0x186   :  { %v160_v9 = vsub.f32 %v156_v6, %v158_v4  ;;  %v291_v14 = vpop.xlane.xlu0 %290 }
 0x187   :  { %v293_v13 = vpop.xlane.xlu1 %292  ;;  %v163_v16 = vadd.f32 1e-05, %v159_v10  ;;  %v296_v18 = vmul.f32 0.0078125, %v291_v14 }
 0x188   :  { %v164_v15 = vadd.f32 1e-05, %v160_v9  ;;  %v297_v17 = vmul.f32 0.0078125, %v293_v13 }
 0x189   :  { %v300_v20 = vsub.f32 %v296_v18, %v298_v12 }
 0x18a   :  { %592 = vrsqrt.f32 %v164_v15  ;;  %v301_v19 = vsub.f32 %v297_v17, %v299_v11 }
 0x18b   :  { %594 = vrsqrt.f32 %v163_v16  ;;  %v304_v22 = vadd.f32 1e-05, %v300_v20  ;;  %v428_v23 = vpop.xlane.xlu1 %427 }
 0x18c   :  { %v305_v21 = vadd.f32 1e-05, %v301_v19  ;;  %v436_v24 = vmul.f32 0.0078125, %v428_v23 }
 0x18d   :  { %v426_v25 = vpop.xlane.xlu0 %425 }
 0x18e   :  { %596 = vrsqrt.f32 %v305_v21  ;;  %v435_v26 = vmul.f32 0.0078125, %v426_v25  ;;  %v440_v28 = vmul.f32 %v436_v24, %v436_v24  ;;  %v444_v1 = vsub.f32 %v755_v52, %v436_v24 }
 0x18f   :  { %598 = vrsqrt.f32 %v304_v22  ;;  %v434_v27 = vpop.xlane.xlu1 %433 }
 0x190   :  { %v438_v29 = vmul.f32 0.0078125, %v434_v27  ;;  %v439_v35 = vmul.f32 %v435_v26, %v435_v26  ;;  %v443_v10 = vsub.f32 %v757_v54, %v435_v26 }
 0x191   :  { %v432_v32 = vpop.xlane.xlu0 %431 }
 0x192   :  { %v442_v36 = vsub.f32 %v438_v29, %v440_v28  ;;  %v437_v37 = vmul.f32 0.0078125, %v432_v32 }
 0x194   :  { %v446_v41 = vadd.f32 1e-05, %v442_v36  ;;  %v441_v42 = vsub.f32 %v437_v37, %v439_v35 }
 0x196   :  { %600 = vrsqrt.f32 %v446_v41  ;;  %v445_v50 = vadd.f32 1e-05, %v441_v42 }
 0x197   :  { %v593_v48 = vpop.eup %592 }
 0x198   :  { %v595_v51 = vpop.eup %594  ;;  %v168_v55 = vmul.f32 %v593_v48, %v162_v46  ;;  %602 = vrsqrt.f32 %v445_v50 }
 0x199   :  { %v167_v56 = vmul.f32 %v595_v51, %v161_v49 }
 0x19a   :  { %v174_v58 = vmul.f32 %v172_v45, %v168_v55 }
 0x19b   :  { %v597_v59 = vpop.eup %596  ;;  %v173_v60 = vmul.f32 %v172_v45, %v167_v56 }
 0x19c   :  { %v599_v61 = vpop.eup %598  ;;  %v180_v62 = vadd.f32 %v178_v53, %v174_v58  ;;  %v309_v63 = vmul.f32 %v597_v59, %v303_v31 }
 0x19d   :  { %v179_v0 = vadd.f32 %v178_v53, %v173_v60  ;;  %v308_v33 = vmul.f32 %v599_v61, %v302_v39 }
 0x19e   :  { %v182_v2 = vmax.f32 %v180_v62, 0.0  ;;  %v315_v3 = vmul.f32 %v313_v57, %v309_v63 }
 0x19f   :  { %v181_v4 = vmax.f32 %v179_v0, 0.0  ;;  %v314_v5 = vmul.f32 %v313_v57, %v308_v33 }
 0x1a0   :  { %184 = vst [vmem:[#allocation7 + $0x20] sm:$0xff] %v182_v2  ;;  %v321_v6 = vadd.f32 %v319_v43, %v315_v3 }
 0x1a1   :  { %183 = vst [vmem:[#allocation7] sm:$0xff] %v181_v4  ;;  %v320_v40 = vadd.f32 %v319_v43, %v314_v5 }
 0x1a2   :  { %v323_v7 = vmax.f32 %v321_v6, 0.0 }
 0x1a3   :  { %v322_v44 = vmax.f32 %v320_v40, 0.0  ;;  %v601_v9 = vpop.eup %600 }
 0x1a4   :  { %325 = vst [vmem:[#allocation7 + $0x28] sm:$0xff] %v323_v7  ;;  %v450_v11 = vmul.f32 %v601_v9, %v444_v1 }
 0x1a5   :  { %324 = vst [vmem:[#allocation7 + $0x8] sm:$0xff] %v322_v44  ;;  %v603_v12 = vpop.eup %602 }
 0x1a6   :  { %v456_v13 = vmul.f32 %v454_v8, %v450_v11  ;;  %v449_v14 = vmul.f32 %v603_v12, %v443_v10 }
 0x1a8   :  { %v462_v15 = vadd.f32 %v460_v34, %v456_v13  ;;  %v455_v16 = vmul.f32 %v454_v8, %v449_v14 }
 0x1aa   :  { %v464_v17 = vmax.f32 %v462_v15, 0.0  ;;  %v461_v18 = vadd.f32 %v460_v34, %v455_v16 }
 0x1ac   :  { %466 = vst [vmem:[#allocation7 + $0x30] sm:$0xff] %v464_v17  ;;  %v463_v52 = vmax.f32 %v461_v18, 0.0 }
 0x1ae   :  { %465 = vst [vmem:[#allocation7 + $0x10] sm:$0xff] %v463_v52 }
 0x1af   :  { %655 = shalt.err (!%p652_p0)
}
 0x1b0   :  { %s675_s10 = smov 512   ;;  %s676_s11 = smov 32  }
 0x1b1   :  { %483 = dma.vmem_to_hbm [thread:$0]  %s478_s8, 1024, %s797_s4, [#allocation4], %s675_s10, %s675_s10, %s676_s11  }
 0x1b2   :  { %668 = dma.done.wait [#allocation4], 1024  }
 0x1b3   :  { %669 = vsyncadd [#allocation4], 4294966272 }
 0x1b4   :  { %487 = vsyncpa [#allocation3], 1 }
 0x1b5   :  { %488 = vsyncpa [#allocation6], 1 }
 0x1b6   :  { %489 = vsyncpa [#allocation4], 1 }

</bundles_post_ra>
